<compile_context>
chip_gen: v6e
topology: v6e:2x2x1
jax: 0.10.0
libtpu: 0.0.40
codegen_flags: <defaults>
</compile_context>

<pallas_src>
import functools

import jax
import jax.numpy as jnp
from jax.experimental import pallas as pl
from jax.experimental.pallas import tpu as pltpu


def _round_up(x, m):
    return ((x + m - 1) // m) * m


def _round_down(x, m):
    return (x // m) * m


def _min_sublane_rows(dtype):
    size = jnp.dtype(dtype).itemsize
    if size >= 4:
        return 8
    if size == 2:
        return 16
    return 32


def _hw_budgets():
    """Return (block_budget_bytes_f32_equiv, vmem_limit_bytes) per TPU gen."""
    try:
        vmem = pltpu.get_tpu_info().vmem_capacity_bytes
    except Exception:
        vmem = 64 * 1024 * 1024  # be conservative if the query is unavailable
    if vmem >= 96 * 1024 * 1024:
        # v5e / v6e: 128 MiB physical VMEM.
        return 12 * 1024 * 1024, 96 * 1024 * 1024
    # v7x: 64 MiB per TensorCore (also the safe fallback).
    return 6 * 1024 * 1024, 48 * 1024 * 1024


# --------------------- single-pass kernel: full instances per block ---------------------


def _instnorm_rows_kernel(x_ref, o_ref, *, eps, inv_n):
    # x_ref / o_ref: (Cb, L) -- Cb instances, full spatial extent (lane-dense).
    x = x_ref[...].astype(jnp.float32)
    s = jnp.sum(x, axis=-1, keepdims=True)
    sq = jnp.sum(x * x, axis=-1, keepdims=True)
    mean = s * inv_n
    var = jnp.maximum(sq * inv_n - mean * mean, 0.0)   # biased variance (PyTorch)
    inv = jax.lax.rsqrt(var + eps)
    o_ref[...] = ((x - mean) * inv).astype(o_ref.dtype)


# ------------- chunked two-pass kernels: instance split over spatial chunks -------------


def _instnorm_stats_kernel(x_ref, mean_ref, rstd_ref, *, eps, inv_n, n_cols, lc,
                           mask_tail):
    # Grid: (row_blocks, col_chunks); col axis is the reduction ("arbitrary").
    # mean_ref / rstd_ref blocks stay resident across the col axis and serve as
    # running sum / running sum-of-squares accumulators until the last chunk.
    c = pl.program_id(1)

    @pl.when(c == 0)
    def _():
        mean_ref[...] = jnp.zeros_like(mean_ref)
        rstd_ref[...] = jnp.zeros_like(rstd_ref)

    x = x_ref[...].astype(jnp.float32)
    if mask_tail:
        # Ragged column tail: Pallas OOB block contents are unspecified, so zero
        # the lanes past the true spatial extent before accumulating.
        col = jax.lax.broadcasted_iota(jnp.int32, x.shape, 1) + c * lc
        x = jnp.where(col < n_cols, x, 0.0)

    mean_ref[...] += jnp.sum(x, axis=-1, keepdims=True)        # running sum(x)
    rstd_ref[...] += jnp.sum(x * x, axis=-1, keepdims=True)    # running sum(x*x)

    @pl.when(c == pl.num_programs(1) - 1)
    def _():
        mean = mean_ref[...] * inv_n
        var = jnp.maximum(rstd_ref[...] * inv_n - mean * mean, 0.0)
        mean_ref[...] = mean
        rstd_ref[...] = jax.lax.rsqrt(var + eps)


def _instnorm_apply_kernel(x_ref, mean_ref, rstd_ref, o_ref):
    x = x_ref[...].astype(jnp.float32)
    o_ref[...] = ((x - mean_ref[...]) * rstd_ref[...]).astype(o_ref.dtype)


# ------------------------------------- wrappers --------------------------------------------


def _instance_norm_rows(x2d, eps, max_block_bytes=None):
    """Instance norm over rows of a (num_instances, spatial) array."""
    R, L = x2d.shape
    orig_dtype = x2d.dtype
    itemsize = jnp.dtype(orig_dtype).itemsize
    min_rows = _min_sublane_rows(orig_dtype)
    inv_n = 1.0 / L

    block_budget, vmem_limit = _hw_budgets()
    if max_block_bytes is not None:
        block_budget = max_block_bytes

    # Size blocks by their f32-equivalent footprint so in-kernel f32 temporaries
    # (casts, x*x) stay within the scoped VMEM limit for sub-32-bit inputs too.
    row_bytes_f32 = L * 4

    if min_rows * row_bytes_f32 <= block_budget:
        # -------- single pass: each block holds Cb complete instances --------
        if R <= min_rows:
            cb = R                                    # block == full row extent
        else:
            cb = max(min_rows, _round_down(block_budget // row_bytes_f32, min_rows))
            # Target >= 4 grid steps so in/out DMAs pipeline (and both v7x TCs
            # get work); never below the dtype's min sublane tile, never > R.
            target_steps = 4
            if pl.cdiv(R, cb) < target_steps:
                cb = max(min_rows, _round_up(pl.cdiv(R, target_steps), min_rows))
            cb = min(cb, _round_down(R, min_rows))
        grid_r = pl.cdiv(R, cb)

        kernel = functools.partial(_instnorm_rows_kernel, eps=eps, inv_n=inv_n)
        return pl.pallas_call(
            kernel,
            out_shape=jax.ShapeDtypeStruct((R, L), orig_dtype),
            grid_spec=pltpu.PrefetchScalarGridSpec(
                num_scalar_prefetch=0,
                grid=(grid_r,),
                in_specs=[pl.BlockSpec((cb, L), lambda r: (r, 0))],
                out_specs=pl.BlockSpec((cb, L), lambda r: (r, 0)),
            ),
            compiler_params=pltpu.CompilerParams(
                dimension_semantics=("parallel",),
                vmem_limit_bytes=vmem_limit),
        )(x2d)

    # -------- chunked two-pass: instance too large for one block (big 3-D volumes) --------
    cb = min_rows if R >= min_rows else R
    lc_max = max(128, _round_down(block_budget // max(1, cb * 4), 128))
    if lc_max >= L:
        lc = L
    else:
        # Balance the chunks so the ragged tail is as small as possible.
        n_chunks = pl.cdiv(L, lc_max)
        lc = _round_up(pl.cdiv(L, n_chunks), 128)
    grid_r = pl.cdiv(R, cb)
    grid_c = pl.cdiv(L, lc)
    ragged_cols = (grid_c * lc) != L

    stats_kernel = functools.partial(
        _instnorm_stats_kernel, eps=eps, inv_n=inv_n, n_cols=L, lc=lc,
        mask_tail=ragged_cols)
    mean, rstd = pl.pallas_call(
        stats_kernel,
        out_shape=(jax.ShapeDtypeStruct((R, 1), jnp.float32),
                   jax.ShapeDtypeStruct((R, 1), jnp.float32)),
        grid_spec=pltpu.PrefetchScalarGridSpec(
            num_scalar_prefetch=0,
            grid=(grid_r, grid_c),
            in_specs=[pl.BlockSpec((cb, lc), lambda r, c: (r, c))],
            out_specs=[pl.BlockSpec((cb, 1), lambda r, c: (r, 0)),
                       pl.BlockSpec((cb, 1), lambda r, c: (r, 0))],
        ),
        compiler_params=pltpu.CompilerParams(
            dimension_semantics=("parallel", "arbitrary"),
            vmem_limit_bytes=vmem_limit),
    )(x2d)

    return pl.pallas_call(
        _instnorm_apply_kernel,
        out_shape=jax.ShapeDtypeStruct((R, L), orig_dtype),
        grid_spec=pltpu.PrefetchScalarGridSpec(
            num_scalar_prefetch=0,
            grid=(grid_r, grid_c),
            in_specs=[pl.BlockSpec((cb, lc), lambda r, c: (r, c)),
                      pl.BlockSpec((cb, 1), lambda r, c: (r, 0)),
                      pl.BlockSpec((cb, 1), lambda r, c: (r, 0))],
            out_specs=pl.BlockSpec((cb, lc), lambda r, c: (r, c)),
        ),
        compiler_params=pltpu.CompilerParams(
            dimension_semantics=("parallel", "parallel"),
            vmem_limit_bytes=vmem_limit),
    )(x2d, mean, rstd)


def instance_norm_2d(x, eps=1e-5, max_block_bytes=None):
    """InstanceNorm2d forward (affine=False, no running stats). x: (N, C, H, W)."""
    N, C, H, W = x.shape
    y = _instance_norm_rows(x.reshape(N * C, H * W), eps, max_block_bytes)
    return y.reshape(N, C, H, W)


def instance_norm_3d(x, eps=1e-5, max_block_bytes=None):
    """InstanceNorm3d forward. x: (N, C, D, H, W)."""
    N, C, D, H, W = x.shape
    y = _instance_norm_rows(x.reshape(N * C, D * H * W), eps, max_block_bytes)
    return y.reshape(N, C, D, H, W)


def instance_norm(x, type="2d", eps=1e-5, **kwargs):
    if "2d" in type.lower():
        return instance_norm_2d(x, eps=eps, **kwargs)
    elif "3d" in type.lower():
        return instance_norm_3d(x, eps=eps, **kwargs)
    raise ValueError(f"unknown type: {type}")


def _reference_instance_norm(x, eps=1e-5):
    xf = x.astype(jnp.float32)
    axes = tuple(range(2, x.ndim))
    mean = jnp.mean(xf, axis=axes, keepdims=True)
    var = jnp.mean((xf - mean) ** 2, axis=axes, keepdims=True)
    return ((xf - mean) * jax.lax.rsqrt(var + eps)).astype(x.dtype)


if __name__ == "__main__":
    key = jax.random.PRNGKey(0)
    k1, k2, k3, k4 = jax.random.split(key, 4)

    # 2D case: (N, C, H, W)
    x2 = jax.random.normal(k1, (2, 4, 16, 16), dtype=jnp.float32)
    y2 = jax.block_until_ready(instance_norm(x2, type="2d"))
    ref2 = _reference_instance_norm(x2)
    assert jnp.allclose(y2, ref2, atol=1e-4, rtol=1e-4)

    # 2D with ragged rows (N*C = 10, not a multiple of 8) and non-128 width.
    x2b = jax.random.normal(k2, (2, 5, 16, 20), dtype=jnp.float32)
    y2b = jax.block_until_ready(instance_norm(x2b, type="2d"))
    ref2b = _reference_instance_norm(x2b)
    assert jnp.allclose(y2b, ref2b, atol=1e-4, rtol=1e-4)

    # 3D case: (N, C, D, H, W)
    x3 = jax.random.normal(k3, (2, 4, 4, 8, 16), dtype=jnp.float32)
    y3 = jax.block_until_ready(instance_norm(x3, type="3d"))
    ref3 = _reference_instance_norm(x3)
    assert jnp.allclose(y3, ref3, atol=1e-4, rtol=1e-4)

    # bf16 input exercises the dtype-aware (16-row) sublane blocking.
    xb = jax.random.normal(k4, (2, 16, 16, 16), dtype=jnp.float32).astype(jnp.bfloat16)
    yb = jax.block_until_ready(instance_norm(xb, type="2d"))
    refb = _reference_instance_norm(xb)
    assert jnp.allclose(yb.astype(jnp.float32), refb.astype(jnp.float32),
                        atol=2e-2, rtol=2e-2)

    # Force the chunked two-pass path (large-instance fallback), including the
    # ragged row/column tails handled in-kernel (no host-side padding).
    y2c = jax.block_until_ready(instance_norm(x2b, type="2d", max_block_bytes=512))
    assert jnp.allclose(y2c, ref2b, atol=1e-4, rtol=1e-4)
    y3c = jax.block_until_ready(instance_norm(x3, type="3d", max_block_bytes=512))
    assert jnp.allclose(y3c, ref3, atol=1e-4, rtol=1e-4)

    print("KERNEL_OK")
</pallas_src>

<mosaic_0001>
module attributes {stable_mosaic.version = 11 : i64} {
  func.func @_instnorm_rows_kernel(%arg0: i32, %arg1: memref<8x256xf32, #tpu.memory_space<vmem>>, %arg2: memref<8x256xf32, #tpu.memory_space<vmem>>) attributes {dimension_semantics = [#tpu.dimension_semantics<parallel>], iteration_bounds = array<i64: 1>, scalar_prefetch = 0 : i64, scratch_operands = 0 : i64, tpu.core_type = #tpu.core_type<tc>, window_params = [{transform_indices = @transform_0, window_bounds = array<i64: 8, 256>}, {transform_indices = @transform_1, window_bounds = array<i64: 8, 256>}]} {
    %c0 = arith.constant 0 : index
    %c0_0 = arith.constant 0 : index
    %0 = vector.load %arg1[%c0, %c0_0] : memref<8x256xf32, #tpu.memory_space<vmem>>, vector<8x256xf32>
    %cst = arith.constant dense<0.000000e+00> : vector<8xf32>
    %1 = vector.multi_reduction <add>, %0, %cst [1] : vector<8x256xf32> to vector<8xf32>
    %2 = vector.shape_cast %1 : vector<8xf32> to vector<8x1xf32>
    %3 = arith.mulf %0, %0 : vector<8x256xf32>
    %cst_1 = arith.constant dense<0.000000e+00> : vector<8xf32>
    %4 = vector.multi_reduction <add>, %3, %cst_1 [1] : vector<8x256xf32> to vector<8xf32>
    %5 = vector.shape_cast %4 : vector<8xf32> to vector<8x1xf32>
    %cst_2 = arith.constant 3.906250e-03 : f32
    %6 = vector.broadcast %cst_2 : f32 to vector<8x1xf32>
    %7 = arith.mulf %2, %6 : vector<8x1xf32>
    %cst_3 = arith.constant 3.906250e-03 : f32
    %8 = vector.broadcast %cst_3 : f32 to vector<8x1xf32>
    %9 = arith.mulf %5, %8 : vector<8x1xf32>
    %10 = arith.mulf %7, %7 : vector<8x1xf32>
    %11 = arith.subf %9, %10 : vector<8x1xf32>
    %cst_4 = arith.constant 0.000000e+00 : f32
    %12 = vector.broadcast %cst_4 : f32 to vector<8x1xf32>
    %13 = arith.maximumf %11, %12 : vector<8x1xf32>
    %cst_5 = arith.constant 9.99999974E-6 : f32
    %14 = vector.broadcast %cst_5 : f32 to vector<8x1xf32>
    %15 = arith.addf %13, %14 : vector<8x1xf32>
    %16 = math.rsqrt %15 : vector<8x1xf32>
    %17 = vector.broadcast %7 : vector<8x1xf32> to vector<8x256xf32>
    %18 = arith.subf %0, %17 : vector<8x256xf32>
    %19 = vector.broadcast %16 : vector<8x1xf32> to vector<8x256xf32>
    %20 = arith.mulf %18, %19 : vector<8x256xf32>
    %c0_6 = arith.constant 0 : index
    %c0_7 = arith.constant 0 : index
    %21 = vector.load %arg2[%c0_6, %c0_7] : memref<8x256xf32, #tpu.memory_space<vmem>>, vector<8x256xf32>
    tpu.vector_store %arg2[%c0_6, %c0_7], %20 {strides = array<i32>} : memref<8x256xf32, #tpu.memory_space<vmem>>, vector<8x256xf32>,
    return
  }
  func.func @transform_0(%arg0: i32) -> (i32, i32) {
    %c0_i32 = arith.constant 0 : i32
    %c0_i32_0 = arith.constant 0 : i32
    return %arg0, %c0_i32 : i32, i32
  }
  func.func @transform_1(%arg0: i32) -> (i32, i32) {
    %c0_i32 = arith.constant 0 : i32
    %c0_i32_0 = arith.constant 0 : i32
    return %arg0, %c0_i32 : i32, i32
  }
}

</mosaic_0001>

<bundles_post_ra>
// kernel: tpu_custom_call.1
= control target key start
LH: loop header
LB: loop body
LE: loop exit
PB: predicated region body
PF: predicated region fallthrough
CT: control target
= control target key end

     0   :  { %6 = vsyncpa [#allocation3], 0  ;;  %s125_s0 = inlined_call_operand.hbm [shape: f32[8,256], index: 0, kind: input, shape index: {}]   ;;  %s126_s1 = inlined_call_operand.hbm [shape: f32[8,256], index: 1, kind: output, shape index: {}]  }
   0x1   :  { %7 = vsyncpa [#allocation4], 0  ;;  %s107_s6 = smov [#allocation2]  }
   0x2   :  { %s14_s7 = sshll.u32 %s107_s6, 4  ;;  %s15_s7 = int_to_ptr.vmem [resolvable:$true] %s14_s7 }
   0x3   :  { %s71_s8 = scalar_lea.vmem %s15_s7, 256  ;;  %p76_p1 = scmp.lt.s32.totalorder %s15_s7, %s15_s7 }
   0x4   :  { %p72_p0 = scmp.ne.s32.totalorder %s15_s7, %s71_s8  ;;  %p77_p2 = scmp.lt.s32.totalorder %s71_s8, %s71_s8 }
   0x6   :  { %p78_p3 = por %p77_p2, %p76_p1 }
   0x8   :  { %p79_p4 = pnand %p78_p3, %p72_p0 }
   0xa   :  { %82 = shalt.err (!%p79_p4)
}
   0xb   :  { %17 = dma.hbm_to_vmem [thread:$0]  %s125_s0, 256, %s15_s7, [#allocation3]  }
   0xc   :  { %103 = dma.done.wait [#allocation3], 256  }
   0xd   :  { %104 = vsyncadd [#allocation3], 4294967040  ;;  %v21_v0 = vld [vmem:[#allocation2] sm:$0xff]  ;;  %v22_v1 = vld [vmem:[#allocation2 + $0x8] sm:$0xff]  ;;  %s108_s0 = smov [#allocation5]  }
   0xe   :  { %v23_v2 = vadd.f32 %v22_v1, %v21_v0  ;;  %v26_v3 = vmul.f32 %v21_v0, %v21_v0  ;;  %v27_v4 = vmul.f32 %v22_v1, %v22_v1  ;;  %s50_s11 = sshll.u32 %s108_s0, 4  ;;  %s51_s11 = int_to_ptr.vmem [resolvable:$true] %s50_s11 }
   0xf   :  { %s83_s12 = scalar_lea.vmem %s51_s11, 256  ;;  %p88_p6 = scmp.lt.s32.totalorder %s51_s11, %s51_s11 }
  0x10   :  { %24 = vadd.xlane.f32.xlu0 %v23_v2  ;;  %v28_v5 = vadd.f32 %v27_v4, %v26_v3  ;;  %p84_p5 = scmp.ne.s32.totalorder %s51_s11, %s83_s12  ;;  %p89_p7 = scmp.lt.s32.totalorder %s83_s12, %s83_s12 }
  0x12   :  { %p90_p8 = por %p89_p7, %p88_p6 }
  0x14   :  { %29 = vadd.xlane.f32.xlu0 %v28_v5  ;;  %p91_p9 = pnand %p90_p8, %p84_p5 }
  0x99   :  { %v25_v6 = vpop.xlane.xlu0 %24 }
  0x9a   :  { %v31_v7 = vmul.f32 0.00390625, %v25_v6 }
  0x9c   :  { %v33_v9 = vmul.f32 %v31_v7, %v31_v7  ;;  %v38_v14 = vsub.f32 %v21_v0, %v31_v7  ;;  %v39_v15 = vsub.f32 %v22_v1, %v31_v7 }
  0x9d   :  { %v30_v8 = vpop.xlane.xlu0 %29 }
  0x9e   :  { %v32_v10 = vmul.f32 0.00390625, %v30_v8 }
  0xa0   :  { %v34_v11 = vsub.f32 %v32_v10, %v33_v9 }
  0xa2   :  { %v35_v12 = vmax.f32 %v34_v11, 0.0 }
  0xa4   :  { %v36_v13 = vadd.f32 1e-05, %v35_v12 }
  0xa6   :  { %61 = vrsqrt.f32 %v36_v13 }
  0xb3   :  { %v62_v16 = vpop.eup %61 }
  0xb4   :  { %v40_v17 = vmul.f32 %v62_v16, %v38_v14  ;;  %v41_v18 = vmul.f32 %v62_v16, %v39_v15 }
  0xb6   :  { %42 = vst [vmem:[#allocation5] sm:$0xff] %v40_v17  ;;  %43 = vst [vmem:[#allocation5 + $0x8] sm:$0xff] %v41_v18 }
  0xb7   :  { %94 = shalt.err (!%p91_p9)
}
  0xb8   :  { %53 = dma.vmem_to_hbm [thread:$0]  %s51_s11, 256, %s126_s1, [#allocation4]  }
  0xb9   :  { %105 = dma.done.wait [#allocation4], 256  }
  0xba   :  { %106 = vsyncadd [#allocation4], 4294967040 }
  0xbb   :  { %57 = vsyncpa [#allocation3], 1 }
  0xbc   :  { %58 = vsyncpa [#allocation4], 1 }

</bundles_post_ra>
